<compile_context>
chip_gen: v7x
topology: tpu7x:2x2x1
jax: 0.10.0
libtpu: 0.0.40
codegen_flags: <defaults>
</compile_context>

<pallas_src>
import numpy as np
import jax
import jax.numpy as jnp
from jax.experimental import pallas as pl
from jax.experimental.pallas import tpu as pltpu


def _round_up(x, m):
    return ((x + m - 1) // m) * m


def _make_sc_conv_kernel(C, KH, KW, Wp, dh, dw, Lv):
    def kernel(x_ref, w_ref, s_ref, b_ref, o_ref):
        # x_ref: (1, C, Lpad)    VMEM  padded, lane-flattened planes of image n
        # w_ref: (C, KH*KW)      VMEM  per-channel tap weights (fetched once)
        # s_ref: (Lv, Ho*Wo)     VMEM  0/1 selection matrix (fetched once)
        # b_ref: (1,)            SMEM  bias
        # o_ref: (1, 1, Ho*Wo)   VMEM  lane-dense output row for image n
        slab = x_ref[0]                       # (C, Lpad) hoisted into registers
        wv = w_ref[...]                       # (C, KH*KW)

        # Shift-and-MAC over the KH*KW taps (values only: VPU MACs + XLU shifts).
        acc = jnp.zeros((C, Lv), jnp.float32)
        t = 0
        for kh in range(KH):
            for kw in range(KW):
                off = kh * dh * Wp + kw * dw
                acc = acc + slab[:, off:off + Lv] * wv[:, t:t + 1]
                t += 1
        # TODO(synk): switch to lax.fori_loop(..., unroll=True) if KH*KW grows.

        # Channel reduction: one sublane reduce instead of C-1 masked adds.
        summed = jnp.sum(acc, axis=0, keepdims=True)           # (1, Lv)

        # Valid-pixel extraction (+ any stride/dilation) as one tiny MXU
        # matmul; bias folded in; emitted with a single unmasked store.
        out = jnp.dot(summed, s_ref[...], preferred_element_type=jnp.float32)
        o_ref[0] = out + b_ref[0]

    return kernel


def sc_conv_forward(x, weight, bias, *, stride=(1, 1), padding=(1, 1),
                    dilation=(1, 1)):
    """Forward of sc_conv: nn.Conv2d(in_ch, 1, k, stride, padding, dilation)."""
    N, C, H, W = x.shape
    out_ch, _, KH, KW = weight.shape
    assert out_ch == 1, "sc_conv always has a single output channel"
    sh, sw = stride
    ph, pw = padding
    dh, dw = dilation
    Hp, Wp = H + 2 * ph, W + 2 * pw
    H_out = (Hp - dh * (KH - 1) - 1) // sh + 1
    W_out = (Wp - dw * (KW - 1) - 1) // sw + 1
    HWo = H_out * W_out
    KT = KH * KW

    # Flattened-plane geometry (lane axis of the slab).
    p_last = (H_out - 1) * sh * Wp + (W_out - 1) * sw   # last accumulated pos
    Lv = _round_up(p_last + 1, 128)                     # lane-dense MAC width
    off_max = (KH - 1) * dh * Wp + (KW - 1) * dw        # largest tap shift
    Lpad = _round_up(max(Hp * Wp, off_max + Lv), 128)

    # Zero-padded planes built with a single pad (N*C*Lpad*4 bytes, tiny) --
    # replaces H masked, lane-unaligned in-kernel row stores.
    xp = jnp.pad(x.astype(jnp.float32),
                 ((0, 0), (0, 0), (ph, ph), (pw, pw)))           # (N,C,Hp,Wp)
    slab = xp.reshape(N, C, Hp * Wp)
    slab = jnp.pad(slab, ((0, 0), (0, 0), (0, Lpad - Hp * Wp)))  # (N,C,Lpad)

    # Compile-time 0/1 selection matrix: padded-plane position -> output
    # pixel.  Shape-only (numpy), so it constant-folds; makes stride_w > 1
    # free and keeps the whole epilogue on the otherwise-idle MXU.
    sel = (np.arange(H_out)[:, None] * sh * Wp
           + np.arange(W_out)[None, :] * sw).reshape(-1)
    S_np = np.zeros((Lv, HWo), np.float32)
    S_np[sel, np.arange(HWo)] = 1.0
    S = jnp.asarray(S_np)

    wmap = weight.reshape(C, KT).astype(jnp.float32)    # (C, KH*KW), no N-tile
    b = bias.reshape(-1).astype(jnp.float32)            # (1,)

    kernel = _make_sc_conv_kernel(C, KH, KW, Wp, dh, dw, Lv)

    out = pl.pallas_call(
        kernel,
        out_shape=jax.ShapeDtypeStruct((N, 1, HWo), jnp.float32),
        grid=(N,),
        in_specs=[
            pl.BlockSpec((1, C, Lpad), lambda n: (n, 0, 0)),
            pl.BlockSpec((C, KT), lambda n: (0, 0)),      # same block -> 1 DMA
            pl.BlockSpec((Lv, HWo), lambda n: (0, 0)),    # same block -> 1 DMA
            pl.BlockSpec(memory_space=pltpu.MemorySpace.SMEM),
        ],
        out_specs=pl.BlockSpec((1, 1, HWo), lambda n: (n, 0, 0)),
        compiler_params=pltpu.CompilerParams(
            dimension_semantics=("parallel",)),           # 2 TCs on v7x
    )(slab, wmap, S, b)
    # TODO(synk): for large H*W (e.g. 1080p) replace the dense selection
    # matrix with halo'd H_out row-block tiling on a second grid axis and set
    # vmem_limit_bytes with per-generation budgets (v5e/v6e/v7x).
    return out.reshape(N, 1, H_out, W_out)


if __name__ == "__main__":
    # Module config: sc_conv(in_ch=4, out_ch=1, kernel_size=3, stride=1,
    # padding=1, dilation=1).
    in_ch, kernel_size, stride, padding, dilation = 4, 3, 1, 1, 1
    N, H, W = 2, 16, 16

    key = jax.random.PRNGKey(0)
    k_x, k_w, k_b = jax.random.split(key, 3)

    x = jax.random.normal(k_x, (N, in_ch, H, W), dtype=jnp.float32)

    # Deterministic init mimicking PyTorch Conv2d default (+/- 1/sqrt(fan_in)).
    fan_in = in_ch * kernel_size * kernel_size
    bound = 1.0 / (fan_in ** 0.5)
    weight = jax.random.uniform(k_w, (1, in_ch, kernel_size, kernel_size),
                                minval=-bound, maxval=bound, dtype=jnp.float32)
    bias = jax.random.uniform(k_b, (1,), minval=-bound, maxval=bound,
                              dtype=jnp.float32)

    out = sc_conv_forward(
        x, weight, bias,
        stride=(stride, stride),
        padding=(padding, padding),
        dilation=(dilation, dilation),
    )
    out = jax.block_until_ready(out)

    # Reference check against XLA's conv (same semantics as torch.nn.Conv2d).
    ref = jax.lax.conv_general_dilated(
        x, weight,
        window_strides=(stride, stride),
        padding=((padding, padding), (padding, padding)),
        rhs_dilation=(dilation, dilation),
        dimension_numbers=("NCHW", "OIHW", "NCHW"),
    ) + bias.reshape(1, 1, 1, 1)

    assert out.shape == ref.shape == (N, 1, H, W)
    assert jnp.allclose(out, ref, atol=1e-5, rtol=1e-5)
    print("KERNEL_OK")
</pallas_src>

<mosaic_0001>
module attributes {stable_mosaic.version = 11 : i64} {
  func.func @kernel(%arg0: i32, %arg1: memref<1x4x512xf32, #tpu.memory_space<vmem>>, %arg2: memref<4x9xf32, #tpu.memory_space<vmem>>, %arg3: memref<384x256xf32, #tpu.memory_space<vmem>>, %arg4: memref<1xf32, #tpu.memory_space<smem>>, %arg5: memref<1x1x256xf32, #tpu.memory_space<vmem>>) attributes {dimension_semantics = [#tpu.dimension_semantics<parallel>], iteration_bounds = array<i64: 2>, scalar_prefetch = 0 : i64, scratch_operands = 0 : i64, tpu.core_type = #tpu.core_type<tc>, window_params = [{transform_indices = @transform_0, window_bounds = array<i64: 1, 4, 512>}, {pipeline_mode = #tpu.pipeline_mode<synchronous>, transform_indices = @transform_1, window_bounds = array<i64: 4, 9>}, {pipeline_mode = #tpu.pipeline_mode<synchronous>, transform_indices = @transform_2, window_bounds = array<i64: 384, 256>}, {transform_indices = @transform_3, window_bounds = array<i64: 1>}, {transform_indices = @transform_4, window_bounds = array<i64: 1, 1, 256>}]} {
    %c0 = arith.constant 0 : index
    %c0_0 = arith.constant 0 : index
    %c0_1 = arith.constant 0 : index
    %0 = vector.load %arg1[%c0, %c0_0, %c0_1] : memref<1x4x512xf32, #tpu.memory_space<vmem>>, vector<1x4x512xf32>
    %1 = vector.shape_cast %0 : vector<1x4x512xf32> to vector<4x512xf32>
    %c0_2 = arith.constant 0 : index
    %c0_3 = arith.constant 0 : index
    %2 = vector.load %arg2[%c0_2, %c0_3] : memref<4x9xf32, #tpu.memory_space<vmem>>, vector<4x9xf32>
    %cst = arith.constant 0.000000e+00 : f32
    %3 = vector.broadcast %cst : f32 to vector<4x384xf32>
    %4 = vector.extract_strided_slice %1 {offsets = [0, 0], sizes = [4, 384], strides = [1, 1]} : vector<4x512xf32> to vector<4x384xf32>
    %5 = vector.extract_strided_slice %2 {offsets = [0, 0], sizes = [4, 1], strides = [1, 1]} : vector<4x9xf32> to vector<4x1xf32>
    %6 = vector.broadcast %5 : vector<4x1xf32> to vector<4x384xf32>
    %7 = arith.mulf %4, %6 : vector<4x384xf32>
    %8 = arith.addf %3, %7 : vector<4x384xf32>
    %9 = vector.extract_strided_slice %1 {offsets = [0, 1], sizes = [4, 384], strides = [1, 1]} : vector<4x512xf32> to vector<4x384xf32>
    %10 = vector.extract_strided_slice %2 {offsets = [0, 1], sizes = [4, 1], strides = [1, 1]} : vector<4x9xf32> to vector<4x1xf32>
    %11 = vector.broadcast %10 : vector<4x1xf32> to vector<4x384xf32>
    %12 = arith.mulf %9, %11 : vector<4x384xf32>
    %13 = arith.addf %8, %12 : vector<4x384xf32>
    %14 = vector.extract_strided_slice %1 {offsets = [0, 2], sizes = [4, 384], strides = [1, 1]} : vector<4x512xf32> to vector<4x384xf32>
    %15 = vector.extract_strided_slice %2 {offsets = [0, 2], sizes = [4, 1], strides = [1, 1]} : vector<4x9xf32> to vector<4x1xf32>
    %16 = vector.broadcast %15 : vector<4x1xf32> to vector<4x384xf32>
    %17 = arith.mulf %14, %16 : vector<4x384xf32>
    %18 = arith.addf %13, %17 : vector<4x384xf32>
    %19 = vector.extract_strided_slice %1 {offsets = [0, 18], sizes = [4, 384], strides = [1, 1]} : vector<4x512xf32> to vector<4x384xf32>
    %20 = vector.extract_strided_slice %2 {offsets = [0, 3], sizes = [4, 1], strides = [1, 1]} : vector<4x9xf32> to vector<4x1xf32>
    %21 = vector.broadcast %20 : vector<4x1xf32> to vector<4x384xf32>
    %22 = arith.mulf %19, %21 : vector<4x384xf32>
    %23 = arith.addf %18, %22 : vector<4x384xf32>
    %24 = vector.extract_strided_slice %1 {offsets = [0, 19], sizes = [4, 384], strides = [1, 1]} : vector<4x512xf32> to vector<4x384xf32>
    %25 = vector.extract_strided_slice %2 {offsets = [0, 4], sizes = [4, 1], strides = [1, 1]} : vector<4x9xf32> to vector<4x1xf32>
    %26 = vector.broadcast %25 : vector<4x1xf32> to vector<4x384xf32>
    %27 = arith.mulf %24, %26 : vector<4x384xf32>
    %28 = arith.addf %23, %27 : vector<4x384xf32>
    %29 = vector.extract_strided_slice %1 {offsets = [0, 20], sizes = [4, 384], strides = [1, 1]} : vector<4x512xf32> to vector<4x384xf32>
    %30 = vector.extract_strided_slice %2 {offsets = [0, 5], sizes = [4, 1], strides = [1, 1]} : vector<4x9xf32> to vector<4x1xf32>
    %31 = vector.broadcast %30 : vector<4x1xf32> to vector<4x384xf32>
    %32 = arith.mulf %29, %31 : vector<4x384xf32>
    %33 = arith.addf %28, %32 : vector<4x384xf32>
    %34 = vector.extract_strided_slice %1 {offsets = [0, 36], sizes = [4, 384], strides = [1, 1]} : vector<4x512xf32> to vector<4x384xf32>
    %35 = vector.extract_strided_slice %2 {offsets = [0, 6], sizes = [4, 1], strides = [1, 1]} : vector<4x9xf32> to vector<4x1xf32>
    %36 = vector.broadcast %35 : vector<4x1xf32> to vector<4x384xf32>
    %37 = arith.mulf %34, %36 : vector<4x384xf32>
    %38 = arith.addf %33, %37 : vector<4x384xf32>
    %39 = vector.extract_strided_slice %1 {offsets = [0, 37], sizes = [4, 384], strides = [1, 1]} : vector<4x512xf32> to vector<4x384xf32>
    %40 = vector.extract_strided_slice %2 {offsets = [0, 7], sizes = [4, 1], strides = [1, 1]} : vector<4x9xf32> to vector<4x1xf32>
    %41 = vector.broadcast %40 : vector<4x1xf32> to vector<4x384xf32>
    %42 = arith.mulf %39, %41 : vector<4x384xf32>
    %43 = arith.addf %38, %42 : vector<4x384xf32>
    %44 = vector.extract_strided_slice %1 {offsets = [0, 38], sizes = [4, 384], strides = [1, 1]} : vector<4x512xf32> to vector<4x384xf32>
    %45 = vector.extract_strided_slice %2 {offsets = [0, 8], sizes = [4, 1], strides = [1, 1]} : vector<4x9xf32> to vector<4x1xf32>
    %46 = vector.broadcast %45 : vector<4x1xf32> to vector<4x384xf32>
    %47 = arith.mulf %44, %46 : vector<4x384xf32>
    %48 = arith.addf %43, %47 : vector<4x384xf32>
    %cst_4 = arith.constant dense<0.000000e+00> : vector<384xf32>
    %49 = vector.multi_reduction <add>, %48, %cst_4 [0] : vector<4x384xf32> to vector<384xf32>
    %50 = vector.shape_cast %49 : vector<384xf32> to vector<1x384xf32>
    %c0_5 = arith.constant 0 : index
    %c0_6 = arith.constant 0 : index
    %51 = vector.load %arg3[%c0_5, %c0_6] : memref<384x256xf32, #tpu.memory_space<vmem>>, vector<384x256xf32>
    %cst_7 = arith.constant dense<0.000000e+00> : vector<1x256xf32>
    %52 = tpu.matmul %50, %51, %cst_7 {dimension_numbers = #tpu.dot_dimension_numbers<[1], [0], [0], [1], [0, 0, 1, 1], [], []>} : vector<1x384xf32>, vector<384x256xf32>, vector<1x256xf32> -> vector<1x256xf32>
    %c0_8 = arith.constant 0 : index
    %53 = memref.load %arg4[%c0_8] : memref<1xf32, #tpu.memory_space<smem>>
    %54 = vector.broadcast %53 : f32 to vector<1x256xf32>
    %55 = arith.addf %52, %54 : vector<1x256xf32>
    %c0_9 = arith.constant 0 : index
    %c0_10 = arith.constant 0 : index
    %c0_11 = arith.constant 0 : index
    %56 = vector.load %arg5[%c0_9, %c0_10, %c0_11] : memref<1x1x256xf32, #tpu.memory_space<vmem>>, vector<1x1x256xf32>
    %57 = vector.shape_cast %56 : vector<1x1x256xf32> to vector<1x256xf32>
    %58 = vector.shape_cast %55 : vector<1x256xf32> to vector<1x1x256xf32>
    tpu.vector_store %arg5[%c0_9, %c0_10, %c0_11], %58 {strides = array<i32>} : memref<1x1x256xf32, #tpu.memory_space<vmem>>, vector<1x1x256xf32>,
    return
  }
  func.func @transform_0(%arg0: i32) -> (i32, i32, i32) {
    %c0_i32 = arith.constant 0 : i32
    %c0_i32_0 = arith.constant 0 : i32
    %c0_i32_1 = arith.constant 0 : i32
    return %arg0, %c0_i32, %c0_i32_0 : i32, i32, i32
  }
  func.func @transform_1(%arg0: i32) -> (i32, i32) {
    %c0_i32 = arith.constant 0 : i32
    %c0_i32_0 = arith.constant 0 : i32
    %c0_i32_1 = arith.constant 0 : i32
    return %c0_i32, %c0_i32_0 : i32, i32
  }
  func.func @transform_2(%arg0: i32) -> (i32, i32) {
    %c0_i32 = arith.constant 0 : i32
    %c0_i32_0 = arith.constant 0 : i32
    %c0_i32_1 = arith.constant 0 : i32
    return %c0_i32, %c0_i32_0 : i32, i32
  }
  func.func @transform_3(%arg0: i32) -> i32 {
    %c0_i32 = arith.constant 0 : i32
    %c0_i32_0 = arith.constant 0 : i32
    return %c0_i32 : i32
  }
  func.func @transform_4(%arg0: i32) -> (i32, i32, i32) {
    %c0_i32 = arith.constant 0 : i32
    %c0_i32_0 = arith.constant 0 : i32
    %c0_i32_1 = arith.constant 0 : i32
    return %arg0, %c0_i32, %c0_i32_0 : i32, i32, i32
  }
}

</mosaic_0001>

<bundles_post_ra>
// kernel: tpu_custom_call.1
= control target key start
LH: loop header
LB: loop body
LE: loop exit
PB: predicated region body
PF: predicated region fallthrough
CT: control target
= control target key end

     0   :  { %s1514_s0 = inlined_call_operand.hbm [shape: f32[2,4,512], index: 0, kind: input, shape index: {}]   ;;  %s1515_s1 = inlined_call_operand.vmem [shape: f32[4,9], index: 1, kind: input, shape index: {}]   ;;  %s1516_s2 = inlined_call_operand.hbm [shape: f32[384,256], index: 2, kind: input, shape index: {}]   ;;  %s1517_s3 = inlined_call_operand.<no memory space> [shape: f32[1], index: 3, kind: input, shape index: {}]   ;;  %s1518_s4 = inlined_call_operand.hbm [shape: f32[2,1,256], index: 4, kind: output, shape index: {}]  }
   0x1   :  { %9 = sst [smem:[#allocation2]] %s1517_s3 }
   0x2   :  { %10 = vsyncpa [#allocation4], 0 }
   0x3   :  { %12 = vsyncpa [#allocation4 + $0x1], 0 }
   0x4   :  { %13 = vsyncpa [#allocation7], 0 }
   0x5   :  { %14 = vsyncpa [#allocation5], 0 }
   0x6   :  { %16 = vsyncpa [#allocation5 + $0x1], 0  ;;  %s1254_s17 = smov 0   ;;  %s1256_s18 = smov 0  }
   0x7   :  { %s1258_s19 = smov 0   ;;  %s1260_s20 = smov 0  }
   0x8 LB: > { %s1275_s3 = sadd.s32 4294967295, %s1199_s20   ;;  %s864_s21 = sadd.s32 4294967294, %s1199_s20   ;;  %s1199_s20 = sphi %s1260_s20, %s1538_s20   ;;  %s1195_s19 = sphi %s1258_s19, %s1537_s19   ;;  %s1191_s18 = sphi %s1256_s18, %s1536_s18   ;;  %s1187_s17 = sphi %s1254_s17, %s1535_s17  }
   0x9   : > { %p42_p0 = scmp.ne.s32.totalorder %s1191_s18, %s1187_s17  ;;  %p1519_p1 = scmp.eq.s32.totalorder %s1275_s3, 0 }
   0xa   : > { %p135_p3 = scmp.eq.s32.totalorder %s864_s21, 1  ;;  %p865_p5 = scmp.ge.s32.totalorder %s1199_s20, 1 }
   0xb   : > { %p1284_p4 = por %p1519_p1, %p42_p0  ;;  %p142_p7 = scmp.lt.s32.totalorder %s1199_s20, 3 }
   0xc   : > { %p1289_p6 = por %p135_p3, %p42_p0  ;;  %s1201_s25 = smov [#allocation6]  }
   0xd   : > { %s1522_s22 = scalar_select %p1284_p4, 1, 0 }
   0xe   : > { %s1523_s23 = scalar_select %p1289_p6, 1, 0 }
   0xf   : > { %p1294_p8 = pnand %p865_p5, %p142_p7  ;;  %s157_s26 = sshll.u32 %s1201_s25, 4  ;;  %s1298_s26 = int_to_ptr.vmem [resolvable:$true] %s157_s26 }
  0x10   : > { %s1310_s28 = sadd.s32 1, %s1199_s20   ;;  %s29_s29 = sadd.s32 1, %s1195_s19 }
  0x11   : > { %s1524_s24 = scalar_select %p1294_p8, 1, 0 }
  0x12   : > { %p990_p9 = pneg %p1294_p8  ;;  %s26_s30 = ssub.s32 %s1199_s20, %s1310_s28 }
  0x13   : > { %s1071_s7 = scalar_lea.hbm %s1516_s2, 12288 }
  0x14   : > { %p1305_p11 = pnand %p990_p9, %p1519_p1  ;;  %p1072_p12 = scmp.ne.s32.totalorder %s1516_s2, %s1071_s7 }
  0x15   : > { %p1078_p5 = scmp.lt.u32.totalorder %s1071_s7, %s1516_s2 }
  0x16   : > { %p1073_p13 = pneg %p1305_p11 }
  0x18   : > { %p1074_p0 = pnand %p1073_p13, %p1072_p12 }
  0x1a   : > { %p1075_p3 = pneg %p1074_p0 }
  0x1c   : > { %p1080_p7 = pnand %p1078_p5, %p1075_p3 }
  0x1e   : > { %1083 = shalt.err (!%p1080_p7)
}
  0x1f   : > { %s1084_s12 = scalar_lea.vmem %s1298_s26, 12288  ;;  %p1092_p2 = scmp.lt.s32.totalorder %s1298_s26, %s1298_s26 }
  0x20   : > { %p1085_p9 = scmp.ne.s32.totalorder %s1298_s26, %s1084_s12  ;;  %p1093_p6 = scmp.lt.s32.totalorder %s1084_s12, %s1084_s12 }
  0x22   : > { %p1087_p10 = pnand %p1085_p9, %p1073_p13  ;;  %p1094_p4 = por %p1093_p6, %p1092_p2 }
  0x24   : > { %p1088_p1 = pneg %p1087_p10 }
  0x26   : > { %p1095_p8 = pnand %p1094_p4, %p1088_p1 }
  0x28   : > { %1098 = shalt.err (!%p1095_p8)
}
  0x29   : > { %s1202_s13 = smov 256   ;;  %s1203_s14 = smov 16  }
  0x2a   : > { %993 = dma.hbm_to_vmem [thread:$0]  (!%p1305_p11), %s1516_s2, 12288, %s1298_s26, [#allocation7], %s1202_s13, %s1202_s13, %s1203_s14  }
  0x2b   : > { %p27_p2 = scmp.eq.s32.totalorder %s26_s30, 0  ;;  %p36_p1 = scmp.ne.s32.totalorder %s1195_s19, %s1191_s18 }
  0x2c   : > { %p37_p4 = scmp.eq.s32.totalorder %s1199_s20, 0  ;;  %p1003_p6 = scmp.lt.s32.totalorder %s1199_s20, 2 }
  0x2d   : > { %s1341_s21 = scalar_select %p27_p2, %s1195_s19, %s29_s29  }
  0x2e   : > { %p38_p8 = por %p37_p4, %p36_p1  ;;  %p1526_p10 = scmp.eq.s32.totalorder %s1275_s3, 1 }
  0x2f   : > { %s174_s5 = sand.u32 1, %s1195_s19   ;;  %s880_s6 = sshll.u32 %s1199_s20, 8 }
  0x30   : > { %p1345_p12 = por %p1526_p10, %p36_p1  ;;  %s868_s7 = sshll.u32 %s174_s5, 4 }
  0x31   : > { %s1354_s9 = scalar_lea.hbm %s1514_s0, %s880_s6  ;;  %s178_s26 = scalar_lea.vmem [#allocation3], %s868_s7 }
  0x32   : > { %s186_s29 = sshll.u32 %s178_s26, 4  ;;  %p1356_p11 = pnand %p1003_p6, %p38_p8  ;;  %s1360_s29 = int_to_ptr.vmem [resolvable:$true] %s186_s29 }
  0x33   : > { %s175_s10 = scalar_lea.sflag [#allocation4], %s174_s5  ;;  %s1099_s11 = scalar_lea.hbm %s1354_s9, 256 }
  0x34   : > { %p1100_p13 = scmp.ne.s32.totalorder %s1354_s9, %s1099_s11  ;;  %p1101_p0 = pneg %p1356_p11 }
  0x35   : > { %s1104_s14 = scalar_lea.hbm %s1514_s0, 512  ;;  %p1105_p7 = scmp.lt.u32.totalorder %s1354_s9, %s1514_s0 }
  0x36   : > { %p1102_p3 = pnand %p1101_p0, %p1100_p13  ;;  %p1106_p9 = scmp.lt.u32.totalorder %s1104_s14, %s1099_s11 }
  0x37   : > { %p1108_p1 = scmp.lt.u32.totalorder %s1099_s11, %s1354_s9 }
  0x38   : > { %p1103_p5 = pneg %p1102_p3  ;;  %p1107_p2 = por %p1106_p9, %p1105_p7 }
  0x3a   : > { %p1109_p4 = por %p1108_p1, %p1107_p2 }
  0x3c   : > { %p1110_p6 = pnand %p1109_p4, %p1103_p5 }
  0x3e   : > { %1113 = shalt.err (!%p1110_p6)
}
  0x3f   : > { %s1114_s5 = scalar_lea.vmem %s1360_s29, 256  ;;  %s1204_s6 = smov [#allocation3]  }
  0x40   : > { %p1115_p8 = scmp.ne.s32.totalorder %s1360_s29, %s1114_s5  ;;  %s1119_s7 = sshll.u32 %s1204_s6, 4  ;;  %s1120_s7 = int_to_ptr.vmem [resolvable:$false] %s1119_s7 }
  0x41   : > { %s1121_s27 = scalar_lea.vmem %s1120_s7, 512  ;;  %p1122_p3 = scmp.lt.s32.totalorder %s1360_s29, %s1120_s7 }
  0x42   : > { %p1117_p10 = pnand %p1115_p8, %p1101_p0  ;;  %p1123_p7 = scmp.lt.s32.totalorder %s1121_s27, %s1114_s5 }
  0x44   : > { %p1118_p13 = pneg %p1117_p10  ;;  %p1124_p9 = por %p1123_p7, %p1122_p3 }
  0x46   : > { %p1125_p2 = pnand %p1124_p9, %p1118_p13 }
  0x48   : > { %1128 = shalt.err (!%p1125_p2)
}
  0x49   : > { %997 = dma.hbm_to_vmem [thread:$0]  (!%p1356_p11), %s1354_s9, 256, %s1360_s29, %s175_s10  }
  0x4a   : > { %p1529_p5 = scmp.ne.s32.totalorder %s1524_s24, 0 }
  0x4b   : > { %s1390_s8 = sand.u32 (!%p1529_p5), 1, %s1191_s18   ;;  %p1530_p0 = scmp.ne.s32.totalorder (!%p1529_p5), %s1522_s22, 0 }
  0x4c   : > { %195 = sbr.rel (%p1529_p5) target bundleno = 627 (0x273), region = 36  ;;  %s872_s26 = sshll.u32 (!%p1529_p5), %s1390_s8, 4 }
  0x4d   : > { %s198_s11 = scalar_lea.sflag (!%p1529_p5), [#allocation4], %s1390_s8  ;;  %s1394_s12 = scalar_lea.vmem (!%p1529_p5), [#allocation3], %s872_s26 }
  0x53   : > { %1174 = dma.done.wait (%p1530_p0), %s198_s11, 256  }
  0x54   : > { %1176 = vsyncadd (%p1530_p0), %s198_s11, 4294967040  ;;  %p1531_p11 = scmp.eq.s32.totalorder %s1275_s3, 0 }
  0x56   : > { %1178 = dma.done.wait (%p1531_p11), [#allocation7], 12288   ;;  %p1532_p1 = pmov %p1531_p11 }
  0x57   : > { %v1205_v0 = vmov 1   ;;  %v1206_v1 = vmov 3   ;;  %v232_v2 = vld [vmem:[%s1515_s1] sm:$0xf]  ;;  %v1207_v3 = vmov 2   ;;  %v1208_v4 = vmov 4  }
  0x58   : > { %1180 = vsyncadd (%p1532_p1), [#allocation7], 4294955008  ;;  %1061 = vset.pattern.permute.xlu0 %v1205_v0  ;;  %1063 = vset.pattern.permute.xlu1 %v1206_v1  ;;  %v1209_v5 = vmov 5   ;;  %v1210_v6 = vmov 6   ;;  %v1211_v7 = vmov 7   ;;  %v1212_v8 = vmov 0  }
  0x59   : > { %250 = vperm.xlu0 %1061, %v232_v2   ;;  %309 = vperm.xlu1 %1063, %v232_v2   ;;  %v1213_v9 = vmov 8   ;;  %v507_v10 = vld [vmem:[#allocation6 + $0x8] sm:$0xff]  ;;  %v509_v11 = vld [vmem:[#allocation6 + $0x18] sm:$0xff]  ;;  %v506_v12 = vld [vmem:[#allocation6] sm:$0xff]  ;;  %v1214_v28 = vmov 839922192   ;;  %v240_v30 = vlaneseq }
  0x5a   : > { %v882_v13 = vpack.c.bf16 %v509_v11, %v507_v10  ;;  %v508_v14 = vld [vmem:[#allocation6 + $0x10] sm:$0xff]  ;;  %v511_v15 = vld [vmem:[#allocation6 + $0x28] sm:$0xff]  ;;  %v513_v16 = vld [vmem:[#allocation6 + $0x38] sm:$0xff]  ;;  %v238_v29 = vunpack.c.l.s4 %v1214_v28  ;;  %s1215_s22 = smov 127   ;;  %s1216_s29 = smov 126   ;;  %vm270_vm0 = vcmask 1043456  }
  0x5b   : > { %v884_v17 = vpack.c.bf16 %v508_v14, %v506_v12  ;;  %v886_v18 = vpack.c.bf16 %v513_v16, %v511_v15  ;;  %v510_v19 = vld [vmem:[#allocation6 + $0x20] sm:$0xff]  ;;  %v512_v20 = vld [vmem:[#allocation6 + $0x30] sm:$0xff]  ;;  %v515_v21 = vld [vmem:[#allocation6 + $0x48] sm:$0xff]  ;;  %v1408_v37 = vshrl.u32 %v240_v30, 7  ;;  %s1217_s30 = smov 110   ;;  %s1218_s10 = smov 109  }
  0x5c   : > { %883 = vmatprep.subr.bf16.mxu1 %v882_v13  ;;  %v517_v22 = vld [vmem:[#allocation6 + $0x58] sm:$0xff]  ;;  %v888_v23 = vpack.c.bf16 %v512_v20, %v510_v19  ;;  %v514_v25 = vld [vmem:[#allocation6 + $0x40] sm:$0xff]  ;;  %v516_v26 = vld [vmem:[#allocation6 + $0x50] sm:$0xff]  ;;  %v239_v36 = vunpack.c.0.s8 %v238_v29  ;;  %s1219_s13 = smov 108   ;;  %s1220_s14 = smov 92   ;;  %vm272_vm1 = vcmask 1039360  }
  0x5d   : > { %1062 = vset.pattern.permute.xlu0 %v1207_v3  ;;  %1064 = vset.pattern.permute.xlu1 %v1208_v4  ;;  %v890_v24 = vpack.c.bf16 %v517_v22, %v515_v21  ;;  %v892_v27 = vpack.c.bf16 %v516_v26, %v514_v25  ;;  %v519_v31 = vld [vmem:[#allocation6 + $0x68] sm:$0xff]  ;;  %v521_v32 = vld [vmem:[#allocation6 + $0x78] sm:$0xff]  ;;  %v518_v34 = vld [vmem:[#allocation6 + $0x60] sm:$0xff]  ;;  %s1221_s15 = smov 91   ;;  %s1222_s16 = smov 90   ;;  %vm301_vm2 = vcmask 1031168  }
  0x5e   : > { %280 = vperm.xlu0 %1062, %v232_v2   ;;  %338 = vperm.xlu1 %1064, %v232_v2   ;;  %v894_v33 = vpack.c.bf16 %v521_v32, %v519_v31  ;;  %v520_v35 = vld [vmem:[#allocation6 + $0x70] sm:$0xff]  ;;  %v523_v39 = vld [vmem:[#allocation6 + $0x88] sm:$0xff]  ;;  %v525_v40 = vld [vmem:[#allocation6 + $0x98] sm:$0xff]  ;;  %v1411_v44 = vsub.s32 %v239_v36, %v1408_v37  ;;  %vm330_vm3 = vcmask 900096   ;;  %vm359_vm4 = vcmask 891904   ;;  %s602_s5 = sld [smem:[#allocation2]] }
  0x5f   : > { %885 = vmatpush1.bf16.msra.mxu1 %v884_v17  ;;  %v896_v38 = vpack.c.bf16 %v520_v35, %v518_v34  ;;  %v898_v41 = vpack.c.bf16 %v525_v40, %v523_v39  ;;  %v522_v42 = vld [vmem:[#allocation6 + $0x80] sm:$0xff]  ;;  %v524_v43 = vld [vmem:[#allocation6 + $0x90] sm:$0xff]  ;;  %v527_v46 = vld [vmem:[#allocation6 + $0xa8] sm:$0xff]  ;;  %vm388_vm5 = vcmask 883712   ;;  %vm417_vm6 = vcmask 752640   ;;  %s874_s6 = sshll.u32 %s1390_s8, 1 }
  0x60   : > { %887 = vmatprep.subr.bf16.mxu1 %v886_v18  ;;  %v900_v45 = vpack.c.bf16 %v524_v43, %v522_v42  ;;  %v529_v47 = vld [vmem:[#allocation6 + $0xb8] sm:$0xff]  ;;  %v1414_v49 = vld [vmem:[%s1394_s12] sm:$0xff]  ;;  %v531_v57 = vld [vmem:[#allocation6 + $0xc8] sm:$0xff]  ;;  %vm446_vm7 = vcmask 744448   ;;  %vm475_vm8 = vcmask 736256   ;;  %s881_s7 = sshll.u32 %s1275_s3, 5 }
  0x61   : > { %v902_v51 = vpack.c.bf16 %v529_v47, %v527_v46  ;;  %v526_v52 = vld [vmem:[#allocation6 + $0xa0] sm:$0xff]  ;;  %v528_v53 = vld [vmem:[#allocation6 + $0xb0] sm:$0xff]  ;;  %v533_v58 = vld [vmem:[#allocation6 + $0xd8] sm:$0xff]  ;;  %s229_s27 = scalar_lea.vmem [#allocation8], %s874_s6  ;;  %vm766_vm9 = vcmp.lt.s32.totalorder %v240_v30, 256  ;;  %s1470_s24 = scalar_lea.hbm %s1518_s4, %s881_s7 }
  0x62   : > { %1065 = vset.pattern.permute.xlu1 %v1209_v5  ;;  %1066 = vset.pattern.permute.xlu0 %v1210_v6  ;;  %v904_v55 = vpack.c.bf16 %v528_v53, %v526_v52  ;;  %v1419_v59 = vld [vmem:[%s1394_s12 + $0x8] sm:$0xff]  ;;  %v906_v60 = vpack.c.bf16 %v533_v58, %v531_v57  ;;  %v530_v61 = vld [vmem:[#allocation6 + $0xc0] sm:$0xff]  ;;  %v532_v62 = vld [vmem:[#allocation6 + $0xd0] sm:$0xff]  ;;  %s784_s26 = sshll.u32 %s229_s27, 4  ;;  %s770_s9 = scalar_lea.sflag [#allocation5], %s1390_s8  ;;  %s1472_s26 = int_to_ptr.vmem [resolvable:$true] %s784_s26 }
  0x63   : > { %367 = vperm.xlu1 %1065, %v232_v2   ;;  %396 = vperm.xlu0 %1066, %v232_v2   ;;  %v908_v1 = vpack.c.bf16 %v532_v62, %v530_v61  ;;  %v535_v5 = vld [vmem:[#allocation6 + $0xe8] sm:$0xff]  ;;  %v537_v6 = vld [vmem:[#allocation6 + $0xf8] sm:$0xff]  ;;  %v534_v11 = vld [vmem:[#allocation6 + $0xe0] sm:$0xff]  ;;  %s1225_s3 = smov [#allocation8]  }
  0x64   : > { %889 = vmatpush1.bf16.msra.mxu1 %v888_v23  ;;  %v573_v10 = vld [vmem:[#allocation6 + $0x218] sm:$0xff]  ;;  %v536_v12 = vld [vmem:[#allocation6 + $0xf0] sm:$0xff]  ;;  %v910_v14 = vpack.c.bf16 %v537_v6, %v535_v5  ;;  %v570_v17 = vld [vmem:[#allocation6 + $0x200] sm:$0xff] }
  0x65   : > { %891 = vmatprep.subr.bf16.mxu1 %v890_v24  ;;  %v912_v16 = vpack.c.bf16 %v536_v12, %v534_v11  ;;  %v572_v18 = vld [vmem:[#allocation6 + $0x210] sm:$0xff]  ;;  %v539_v23 = vld [vmem:[#allocation6 + $0x108] sm:$0xff]  ;;  %v541_v24 = vld [vmem:[#allocation6 + $0x118] sm:$0xff] }
  0x66   : > { %v948_v21 = vpack.c.bf16 %v572_v18, %v570_v17  ;;  %v575_v25 = vld [vmem:[#allocation6 + $0x228] sm:$0xff]  ;;  %v914_v26 = vpack.c.bf16 %v541_v24, %v539_v23  ;;  %v538_v28 = vld [vmem:[#allocation6 + $0x100] sm:$0xff]  ;;  %v540_v29 = vld [vmem:[#allocation6 + $0x110] sm:$0xff] }
  0x67   : > { %1067 = vset.pattern.permute.xlu1 %v1211_v7  ;;  %1069 = vset.pattern.permute.xlu0 %v1212_v8  ;;  %v571_v7 = vld [vmem:[#allocation6 + $0x208] sm:$0xff]  ;;  %v576_v34 = vld [vmem:[#allocation6 + $0x230] sm:$0xff]  ;;  %v916_v36 = vpack.c.bf16 %v540_v29, %v538_v28  ;;  %v545_v42 = vld [vmem:[#allocation6 + $0x138] sm:$0xff] }
  0x68   : > { %425 = vperm.xlu1 %1067, %v232_v2   ;;  %235 = vperm.xlu0 %1069, %v232_v2   ;;  %v946_v15 = vpack.c.bf16 %v573_v10, %v571_v7  ;;  %v579_v43 = vld [vmem:[#allocation6 + $0x248] sm:$0xff]  ;;  %v581_v47 = vld [vmem:[#allocation6 + $0x258] sm:$0xff]  ;;  %v548_v5 = vld [vmem:[#allocation6 + $0x150] sm:$0xff] }
  0x69   : > { %893 = vmatpush1.bf16.msra.mxu1 %v892_v27  ;;  %v577_v27 = vld [vmem:[#allocation6 + $0x238] sm:$0xff]  ;;  %v954_v53 = vpack.c.bf16 %v581_v47, %v579_v43  ;;  %v584_v10 = vld [vmem:[#allocation6 + $0x270] sm:$0xff]  ;;  %v587_v17 = vld [vmem:[#allocation6 + $0x288] sm:$0xff] }
  0x6a   : > { %895 = vmatprep.subr.bf16.mxu1 %v894_v33  ;;  %947 = vmatprep.subr.bf16.mxu0 %v946_v15  ;;  %v574_v33 = vld [vmem:[#allocation6 + $0x220] sm:$0xff]  ;;  %v950_v35 = vpack.c.bf16 %v577_v27, %v575_v25  ;;  %v551_v15 = vld [vmem:[#allocation6 + $0x168] sm:$0xff]  ;;  %v592_v43 = vld [vmem:[#allocation6 + $0x2b0] sm:$0xff] }
  0x6b   : > { %949 = vmatpush1.bf16.msra.mxu0 %v948_v21  ;;  %v552_v21 = vld [vmem:[#allocation6 + $0x170] sm:$0xff]  ;;  %v586_v25 = vld [vmem:[#allocation6 + $0x280] sm:$0xff]  ;;  %v561_v47 = vld [vmem:[#allocation6 + $0x1b8] sm:$0xff] }
  0x6c   : > { %1068 = vset.pattern.permute.xlu1 %v1213_v9  ;;  %1070 = vset.pattern.permute.xlu0 %v1213_v9 }
  0x6d   : > { %454 = vperm.xlu1 %1068, %v232_v2   ;;  %897 = vmatpush1.bf16.msra.mxu1 %v896_v38  ;;  %v952_v38 = vpack.c.bf16 %v576_v34, %v574_v33  ;;  %v591_v33 = vld [vmem:[#allocation6 + $0x2a8] sm:$0xff] }
  0x6e   : > { %899 = vmatprep.subr.bf16.mxu1 %v898_v41  ;;  %v543_v41 = vld [vmem:[#allocation6 + $0x128] sm:$0xff]  ;;  %951 = vmatprep.subr.bf16.mxu0 %v950_v35  ;;  %v593_v35 = vld [vmem:[#allocation6 + $0x2b8] sm:$0xff] }
  0x6f   : > { %v918_v46 = vpack.c.bf16 %v545_v42, %v543_v41  ;;  %953 = vmatpush1.bf16.msra.mxu0 %v952_v38  ;;  %v556_v38 = vld [vmem:[#allocation6 + $0x190] sm:$0xff]  ;;  %v590_v42 = vld [vmem:[#allocation6 + $0x2a0] sm:$0xff] }
  0x70   : > { %955 = vmatprep.subr.bf16.mxu0 %v954_v53  ;;  %v560_v53 = vld [vmem:[#allocation6 + $0x1b0] sm:$0xff] }
  0x71   : > { %901 = vmatpush1.bf16.msra.mxu1 %v900_v45 }
  0x72   : > { %903 = vmatprep.subr.bf16.mxu1 %v902_v51 }
  0x75   : > { %905 = vmatpush1.bf16.msra.mxu1 %v904_v55  ;;  %v578_v55 = vld [vmem:[#allocation6 + $0x240] sm:$0xff] }
  0x76   : > { %907 = vmatprep.subr.bf16.mxu1 %v906_v60 }
  0x79   : > { %909 = vmatpush1.bf16.msra.mxu1 %v908_v1  ;;  %v583_v1 = vld [vmem:[#allocation6 + $0x268] sm:$0xff] }
  0x7a   : > { %911 = vmatprep.subr.bf16.mxu1 %v910_v14 }
  0x7d   : > { %913 = vmatpush1.bf16.msra.mxu1 %v912_v16  ;;  %v553_v16 = vld [vmem:[#allocation6 + $0x178] sm:$0xff] }
  0x7e   : > { %915 = vmatprep.subr.bf16.mxu1 %v914_v26  ;;  %v926_v18 = vpack.c.bf16 %v553_v16, %v551_v15  ;;  %v588_v26 = vld [vmem:[#allocation6 + $0x290] sm:$0xff] }
  0x7f   : > { %v964_v29 = vpack.c.bf16 %v588_v26, %v586_v25 }
  0x81   : > { %917 = vmatpush1.bf16.msra.mxu1 %v916_v36  ;;  %v554_v36 = vld [vmem:[#allocation6 + $0x180] sm:$0xff] }
  0x82   : > { %919 = vmatprep.subr.bf16.mxu1 %v918_v46  ;;  %v932_v41 = vpack.c.bf16 %v556_v38, %v554_v36  ;;  %v559_v46 = vld [vmem:[#allocation6 + $0x1a8] sm:$0xff] }
  0xd8   : > { %v251_v48 = vpop.permute.xlu0 %250  ;;  %v310_v50 = vpop.permute.xlu1 %309 }
  0xd9   : > { %v258_v54 = vrot.slane %v251_v48, %v1411_v44  ;;  %v317_v3 = vrot.slane %v310_v50, %v1411_v44  ;;  %v542_v48 = vld [vmem:[#allocation6 + $0x120] sm:$0xff]  ;;  %v544_v50 = vld [vmem:[#allocation6 + $0x130] sm:$0xff] }
  0xdb   : > { %v260_v56 = vmul.f32 %v258_v54, %v1414_v49  ;;  %v261_v4 = vmul.f32 %v258_v54, %v1419_v59  ;;  %v319_v19 = vmul.f32 %v317_v3, %v1414_v49  ;;  %v320_v39 = vmul.f32 %v317_v3, %v1419_v59  ;;  %v585_v3 = vld [vmem:[#allocation6 + $0x278] sm:$0xff] }
  0xdc   : > { %v920_v54 = vpack.c.bf16 %v544_v50, %v542_v48  ;;  %v958_v7 = vpack.c.bf16 %v585_v3, %v583_v1  ;;  %v595_v48 = vld [vmem:[#allocation6 + $0x2c8] sm:$0xff]  ;;  %v934_v50 = vpack.c.bf16 %v561_v47, %v559_v46  ;;  %v562_v3 = vld [vmem:[#allocation6 + $0x1c0] sm:$0xff] }
  0xdd   : > { %264 = vrot.lane.b32.xlu1 %v260_v56, %s1215_s22  ;;  %v281_v63 = vpop.permute.xlu0 %280  ;;  %v339_v0 = vpop.permute.xlu1 %338  ;;  %v580_v56 = vld [vmem:[#allocation6 + $0x250] sm:$0xff] }
  0xde   : > { %v288_v2 = vrot.slane %v281_v63, %v1411_v44  ;;  %v346_v9 = vrot.slane %v339_v0, %v1411_v44  ;;  %v956_v62 = vpack.c.bf16 %v580_v56, %v578_v55  ;;  %v547_v63 = vld [vmem:[#allocation6 + $0x148] sm:$0xff]  ;;  %v549_v0 = vld [vmem:[#allocation6 + $0x158] sm:$0xff]  ;;  %921 = vmatpush1.bf16.msra.mxu1 %v920_v54 }
  0xe0   : > { %v290_v8 = vmul.f32 %v288_v2, %v1414_v49  ;;  %v291_v13 = vmul.f32 %v288_v2, %v1419_v59  ;;  %v348_v31 = vmul.f32 %v346_v9, %v1414_v49  ;;  %v349_v51 = vmul.f32 %v346_v9, %v1419_v59  ;;  %957 = vmatpush1.bf16.msra.mxu0 %v956_v62  ;;  %v582_v9 = vld [vmem:[#allocation6 + $0x260] sm:$0xff]  ;;  %v563_v62 = vld [vmem:[#allocation6 + $0x1c8] sm:$0xff] }
  0xe1   : > { %266 = vrot.lane.b32.xlu1 %v261_v4, %s1215_s22  ;;  %v922_v2 = vpack.c.bf16 %v549_v0, %v547_v63  ;;  %v546_v4 = vld [vmem:[#allocation6 + $0x140] sm:$0xff]  ;;  %959 = vmatprep.subr.bf16.mxu0 %v958_v7  ;;  %v565_v63 = vld [vmem:[#allocation6 + $0x1d8] sm:$0xff]  ;;  %v599_v0 = vld [vmem:[#allocation6 + $0x2e8] sm:$0xff]  ;;  %s1129_s22 = scalar_lea.vmem %s1472_s26, 32 }
  0xe2   : > { %294 = vrot.lane.b32.xlu0 %v290_v8, %s1216_s29  ;;  %v368_v20 = vpop.permute.xlu1 %367  ;;  %v397_v22 = vpop.permute.xlu0 %396  ;;  %v924_v8 = vpack.c.bf16 %v548_v5, %v546_v4  ;;  %v938_v1 = vpack.c.bf16 %v565_v63, %v563_v62  ;;  %v564_v4 = vld [vmem:[#allocation6 + $0x1d0] sm:$0xff]  ;;  %v1223_v5 = vmov 0.0   ;;  %v598_v7 = vld [vmem:[#allocation6 + $0x2e0] sm:$0xff]  ;;  %p1130_p4 = scmp.ne.s32.totalorder %s1472_s26, %s1129_s22 }
  0xe3   : > { %v375_v32 = vrot.slane %v368_v20, %v1411_v44  ;;  %v404_v58 = vrot.slane %v397_v22, %v1411_v44  ;;  %923 = vmatprep.subr.bf16.mxu1 %v922_v2  ;;  %v550_v20 = vld [vmem:[#allocation6 + $0x160] sm:$0xff]  ;;  %v601_v2 = vld [vmem:[#allocation6 + $0x2f8] sm:$0xff]  ;;  %739 = vmatprep.mubr.f32.mxu0 %v1223_v5 }
  0xe4   : > { %925 = vmatpush1.bf16.msra.mxu1 %v924_v8  ;;  %v928_v24 = vpack.c.bf16 %v552_v21, %v550_v20  ;;  %v600_v8 = vld [vmem:[#allocation6 + $0x2f0] sm:$0xff]  ;;  %p1131_p6 = pnand %p1130_p4, %p1345_p12 }
  0xe5   : > { %296 = vrot.lane.b32.xlu1 %v291_v13, %s1216_s29  ;;  %v377_v57 = vmul.f32 %v375_v32, %v1414_v49  ;;  %v378_v6 = vmul.f32 %v375_v32, %v1419_v59  ;;  %v406_v11 = vmul.f32 %v404_v58, %v1414_v49  ;;  %v960_v13 = vpack.c.bf16 %v584_v10, %v582_v9  ;;  %v557_v32 = vld [vmem:[#allocation6 + $0x198] sm:$0xff]  ;;  %v567_v9 = vld [vmem:[#allocation6 + $0x1e8] sm:$0xff]  ;;  %s1133_s29 = sshll.u32 %s1225_s3, 4  ;;  %s1134_s29 = int_to_ptr.vmem [resolvable:$false] %s1133_s29 }
  0xe6   : > { %323 = vrot.lane.b32.xlu0 %v319_v19, %s1217_s30  ;;  %v589_v19 = vld [vmem:[#allocation6 + $0x298] sm:$0xff]  ;;  %v407_v22 = vmul.f32 %v404_v58, %v1419_v59  ;;  %927 = vmatprep.subr.bf16.mxu1 %v926_v18  ;;  %v976_v10 = vpack.c.bf16 %v600_v8, %v598_v7  ;;  %p1132_p8 = pneg %p1131_p6  ;;  %p1136_p10 = scmp.lt.s32.totalorder %s1472_s26, %s1134_s29 }
  0xe7   : > { %v236_v40 = vpop.permute.xlu0 %235  ;;  %v426_v52 = vpop.permute.xlu1 %425  ;;  %961 = vmatpush1.bf16.msra.mxu0 %v960_v13  ;;  %v962_v23 = vpack.c.bf16 %v589_v19, %v587_v17  ;;  %v566_v13 = vld [vmem:[#allocation6 + $0x1e0] sm:$0xff] }
  0xe8   : > { %v243_v45 = vrot.slane %v236_v40, %v1411_v44  ;;  %v433_v12 = vrot.slane %v426_v52, %v1411_v44  ;;  %929 = vmatpush1.bf16.msra.mxu1 %v928_v24  ;;  %v966_v40 = vpack.c.bf16 %v593_v35, %v591_v33  ;;  %v558_v52 = vld [vmem:[#allocation6 + $0x1a0] sm:$0xff] }
  0xe9   : > { %325 = vrot.lane.b32.xlu1 %v320_v39, %s1217_s30  ;;  %963 = vmatprep.subr.bf16.mxu0 %v962_v23  ;;  %v936_v56 = vpack.c.bf16 %v560_v53, %v558_v52  ;;  %s1135_s30 = scalar_lea.vmem %s1134_s29, 64 }
  0xea   : > { %352 = vrot.lane.b32.xlu0 %v348_v31, %s1218_s10  ;;  %v1436_v60 = vmul.f32 %v243_v45, %v1414_v49  ;;  %v1439_v61 = vmul.f32 %v243_v45, %v1419_v59  ;;  %v435_v27 = vmul.f32 %v433_v12, %v1414_v49  ;;  %v555_v31 = vld [vmem:[#allocation6 + $0x188] sm:$0xff]  ;;  %v436_v39 = vmul.f32 %v433_v12, %v1419_v59  ;;  %p1137_p13 = scmp.lt.s32.totalorder %s1135_s30, %s1129_s22 }
  0xeb   : > { %v930_v34 = vpack.c.bf16 %v557_v32, %v555_v31  ;;  %965 = vmatpush1.bf16.msra.mxu0 %v964_v29  ;;  %v968_v45 = vpack.c.bf16 %v592_v43, %v590_v42 }
  0xec   : > { %v455_v14 = vpop.permute.xlu1 %454  ;;  %967 = vmatprep.subr.bf16.mxu0 %v966_v40  ;;  %p1138_p3 = por %p1137_p13, %p1136_p10 }
  0xed   : > { %354 = vrot.lane.b32.xlu1 %v349_v51, %s1218_s10  ;;  %v462_v28 = vrot.slane %v455_v14, %v1411_v44  ;;  %931 = vmatprep.subr.bf16.mxu1 %v930_v34  ;;  %v597_v51 = vld [vmem:[#allocation6 + $0x2d8] sm:$0xff]  ;;  %v568_v14 = vld [vmem:[#allocation6 + $0x1f0] sm:$0xff] }
  0xee   : > { %381 = vrot.lane.b32.xlu0 %v377_v57, %s1219_s13  ;;  %933 = vmatpush1.bf16.msra.mxu1 %v932_v41  ;;  %v970_v55 = vpack.c.bf16 %v597_v51, %v595_v48  ;;  %v596_v57 = vld [vmem:[#allocation6 + $0x2d0] sm:$0xff]  ;;  %v944_v15 = vpack.c.bf16 %v568_v14, %v566_v13  ;;  %p1139_p7 = pnand %p1138_p3, %p1132_p8 }
  0xef   : > { %v464_v44 = vmul.f32 %v462_v28, %v1414_v49  ;;  %v465_v54 = vmul.f32 %v462_v28, %v1419_v59  ;;  %969 = vmatpush1.bf16.msra.mxu0 %v968_v45  ;;  %v594_v49 = vld [vmem:[#allocation6 + $0x2c0] sm:$0xff]  ;;  %935 = vmatprep.subr.bf16.mxu1 %v934_v50  ;;  %v974_v59 = vpack.c.bf16 %v601_v2, %v599_v0 }
  0xf0   : > { %v972_v58 = vpack.c.bf16 %v596_v57, %v594_v49  ;;  %971 = vmatprep.subr.bf16.mxu0 %v970_v55 }
  0xf1   : > { %383 = vrot.lane.b32.xlu1 %v378_v6, %s1219_s13  ;;  %v940_v6 = vpack.c.bf16 %v564_v4, %v562_v3 }
  0xf2   : > { %410 = vrot.lane.b32.xlu0 %v406_v11, %s1220_s14  ;;  %937 = vmatpush1.bf16.msra.mxu1 %v936_v56  ;;  %v569_v11 = vld [vmem:[#allocation6 + $0x1f8] sm:$0xff] }
  0xf3   : > { %973 = vmatpush1.bf16.msra.mxu0 %v972_v58  ;;  %939 = vmatprep.subr.bf16.mxu1 %v938_v1  ;;  %v942_v12 = vpack.c.bf16 %v569_v11, %v567_v9 }
  0xf4   : > { %975 = vmatprep.subr.bf16.mxu0 %v974_v59 }
  0xf5   : > { %412 = vrot.lane.b32.xlu1 %v407_v22, %s1220_s14 }
  0xf6   : > { %439 = vrot.lane.b32.xlu0 %v435_v27, %s1221_s15  ;;  %941 = vmatpush1.bf16.msra.mxu1 %v940_v6 }
  0xf7   : > { %977 = vmatpush1.bf16.msra.mxu0 %v976_v10  ;;  %943 = vmatprep.subr.bf16.mxu1 %v942_v12 }
  0xf9   : > { %441 = vrot.lane.b32.xlu1 %v436_v39, %s1221_s15 }
  0xfa   : > { %468 = vrot.lane.b32.xlu0 %v464_v44, %s1222_s16  ;;  %945 = vmatpush1.bf16.msra.mxu1 %v944_v15 }
  0xfd   : > { %470 = vrot.lane.b32.xlu1 %v465_v54, %s1222_s16 }
 0x14f   : > { %v265_v16 = vpop.permute.xlu1 %264 }
 0x150   : > { %v268_v24 = vrot.slane %v265_v16, 4 }
 0x153   : > { %v267_v17 = vpop.permute.xlu1 %266 }
 0x154   : > { %v295_v18 = vpop.permute.xlu0 %294  ;;  %v269_v22 = vrot.slane %v267_v17, 4 }
 0x155   : > { %v298_v25 = vrot.slane %v295_v18, 4 }
 0x156   : > { %v271_v28 = vsel %vm270_vm0, %v268_v24, %v269_v22  ;;  %v274_v32 = vsel %vm272_vm1, %v267_v17, %v269_v22 }
 0x157   : > { %v297_v19 = vpop.permute.xlu1 %296  ;;  %v273_v38 = vsel %vm272_vm1, %v265_v16, %v271_v28  ;;  %v278_v45 = vadd.f32 %v274_v32, %v1439_v61 }
 0x158   : > { %v324_v20 = vpop.permute.xlu0 %323  ;;  %v299_v26 = vrot.slane %v297_v19, 4  ;;  %v277_v47 = vadd.f32 %v273_v38, %v1436_v60 }
 0x159   : > { %v327_v34 = vrot.slane %v324_v20, 4 }
 0x15a   : > { %v300_v33 = vsel %vm270_vm0, %v298_v25, %v299_v26  ;;  %v303_v40 = vsel %vm301_vm2, %v297_v19, %v299_v26 }
 0x15b   : > { %v326_v21 = vpop.permute.xlu1 %325  ;;  %v302_v46 = vsel %vm301_vm2, %v295_v18, %v300_v33  ;;  %v307_v52 = vadd.f32 %v303_v40, %v278_v45 }
 0x15c   : > { %v353_v23 = vpop.permute.xlu0 %352  ;;  %v328_v29 = vrot.slane %v326_v21, 4  ;;  %v306_v55 = vadd.f32 %v302_v46, %v277_v47 }
 0x15d   : > { %v356_v35 = vrot.slane %v353_v23, 4 }
 0x15e   : > { %v329_v41 = vsel %vm270_vm0, %v327_v34, %v328_v29  ;;  %v332_v48 = vsel %vm330_vm3, %v326_v21, %v328_v29 }
 0x15f   : > { %v355_v27 = vpop.permute.xlu1 %354  ;;  %v331_v53 = vsel %vm330_vm3, %v324_v20, %v329_v41  ;;  %v336_v62 = vadd.f32 %v332_v48, %v307_v52  ;;  %v1224_v52 = vmov 1966171168  }
 0x160   : > { %v382_v31 = vpop.permute.xlu0 %381  ;;  %v357_v36 = vrot.slane %v355_v27, 4  ;;  %v335_v63 = vadd.f32 %v331_v53, %v306_v55  ;;  %v750_v53 = vunpack.c.l.s4 %v1224_v52  ;;  %v603_v55 = vstv %s602_s5 }
 0x161   : > { %v385_v42 = vrot.slane %v382_v31, 4 }
 0x162   : > { %v358_v50 = vsel %vm270_vm0, %v356_v35, %v357_v36  ;;  %v361_v56 = vsel %vm359_vm4, %v355_v27, %v357_v36 }
 0x163   : > { %v384_v39 = vpop.permute.xlu1 %383  ;;  %v360_v61 = vsel %vm359_vm4, %v353_v23, %v358_v50  ;;  %v365_v2 = vadd.f32 %v361_v56, %v336_v62 }
 0x164   : > { %v386_v43 = vrot.slane %v384_v39, 4  ;;  %v411_v44 = vpop.permute.xlu0 %410  ;;  %v364_v5 = vadd.f32 %v360_v61, %v335_v63 }
 0x165   : > { %v414_v51 = vrot.slane %v411_v44, 4 }
 0x166   : > { %v387_v49 = vsel %vm270_vm0, %v385_v42, %v386_v43  ;;  %v390_v0 = vsel %vm388_vm5, %v384_v39, %v386_v43 }
 0x167   : > { %v413_v54 = vpop.permute.xlu1 %412  ;;  %v389_v3 = vsel %vm388_vm5, %v382_v31, %v387_v49  ;;  %v394_v8 = vadd.f32 %v390_v0, %v365_v2  ;;  %v751_v49 = vunpack.c.0.s8 %v750_v53 }
 0x168   : > { %v415_v57 = vrot.slane %v413_v54, 4  ;;  %v440_v58 = vpop.permute.xlu0 %439  ;;  %v393_v10 = vadd.f32 %v389_v3, %v364_v5 }
 0x169   : > { %v443_v1 = vrot.slane %v440_v58, 4  ;;  %v754_v0 = vsub.s32 %v751_v49, %v1408_v37 }
 0x16a   : > { %v416_v60 = vsel %vm270_vm0, %v414_v51, %v415_v57  ;;  %v419_v59 = vsel %vm417_vm6, %v413_v54, %v415_v57 }
 0x16b   : > { %v442_v4 = vpop.permute.xlu1 %441  ;;  %v418_v9 = vsel %vm417_vm6, %v411_v44, %v416_v60  ;;  %v423_v14 = vadd.f32 %v419_v59, %v394_v8 }
 0x16c   : > { %v444_v6 = vrot.slane %v442_v4, 4  ;;  %v469_v7 = vpop.permute.xlu0 %468  ;;  %v422_v17 = vadd.f32 %v418_v9, %v393_v10 }
 0x16d   : > { %v472_v13 = vrot.slane %v469_v7, 4 }
 0x16e   : > { %v445_v11 = vsel %vm270_vm0, %v443_v1, %v444_v6  ;;  %v448_v12 = vsel %vm446_vm7, %v442_v4, %v444_v6 }
 0x16f   : > { %v447_v15 = vsel %vm446_vm7, %v440_v58, %v445_v11  ;;  %v471_v16 = vpop.permute.xlu1 %470  ;;  %v452_v19 = vadd.f32 %v448_v12, %v423_v14 }
 0x170   : > { %v473_v18 = vrot.slane %v471_v16, 4  ;;  %v451_v20 = vadd.f32 %v447_v15, %v422_v17 }
 0x172   : > { %v474_v21 = vsel %vm270_vm0, %v472_v13, %v473_v18  ;;  %v477_v22 = vsel %vm475_vm8, %v471_v16, %v473_v18 }
 0x173   : > { %v476_v23 = vsel %vm475_vm8, %v469_v7, %v474_v21  ;;  %v481_v24 = vadd.f32 %v477_v22, %v452_v19 }
 0x174   : > { %v480_v25 = vadd.f32 %v476_v23, %v451_v20 }
 0x175   : > { %v499_v26 = vsel %vm270_vm0, %v481_v24, 0.0 }
 0x176   : > { %v500_v27 = vrot.slane %v499_v26, 4  ;;  %v483_v28 = vcombine.high %v480_v25, %v480_v25  ;;  %v485_v29 = vsel %vm270_vm0, %v480_v25, 0.0 }
 0x177   : > { %v486_v31 = vrot.slane %v485_v29, 4 }
 0x178   : > { %v501_v32 = vadd.f32 %v500_v27, %v499_v26  ;;  %v492_v33 = vsel %vm270_vm0, %v483_v28, 0.0 }
 0x179   : > { %v493_v34 = vrot.slane %v492_v33, 4  ;;  %v487_v35 = vadd.f32 %v486_v31, %v485_v29 }
 0x17a   : > { %v502_v36 = vrot.slane %v501_v32, 2 }
 0x17b   : > { %v494_v38 = vadd.f32 %v493_v34, %v492_v33  ;;  %v488_v39 = vrot.slane %v487_v35, 2 }
 0x17c   : > { %v503_v40 = vadd.f32 %v502_v36, %v501_v32 }
 0x17d   : > { %v495_v41 = vrot.slane %v494_v38, 2  ;;  %v489_v42 = vadd.f32 %v488_v39, %v487_v35 }
 0x17e   : > { %v504_v43 = vrot.slane %v503_v40, 1 }
 0x17f   : > { %v496_v44 = vadd.f32 %v495_v41, %v494_v38  ;;  %v490_v46 = vrot.slane %v489_v42, 1 }
 0x180   : > { %v505_v45 = vadd.f32 %v504_v43, %v503_v40 }
 0x181   : > { %v497_v47 = vrot.slane %v496_v44, 1  ;;  %v491_v50 = vadd.f32 %v490_v46, %v489_v42 }
 0x182   : > { %740 = vmatmul.mubr.f32.vlgmr.msra.gmra.mrb[0].mxu0 %v505_v45 }
 0x183   : > { %v498_v48 = vadd.f32 %v497_v47, %v496_v44 }
 0x185   : > { %668 = vmatprep.mubr.f32.mxu1 %v498_v48 }
 0x186   : > { %669 = vmatmul.mubr.f32.vlgmr.msra.gmra.mrb[0].mxu1 %v491_v50 }
 0x255   : > { %v741_v51 = vpop.f32.mrb[0].mxu0 }
 0x256   : > { %v743_v54 = vpop.f32.mrb[1].mxu0 }
 0x259   : > { %v670_v56 = vpop.f32.mrb[0].mxu1 }
 0x25a   : > { %v671_v57 = vadd.f32 %v670_v56, %v603_v55  ;;  %v672_v58 = vpop.f32.mrb[1].mxu1 }
 0x25b   : > { %v673_v62 = vadd.f32 %v672_v58, %v603_v55 }
 0x25c   : > { %v742_v61 = vadd.f32 %v741_v51, %v671_v57 }
 0x25d   : > { %v744_v63 = vadd.f32 %v743_v54, %v673_v62 }
 0x25f   : > { %v748_v60 = vcombine.low %v742_v61, %v744_v63 }
 0x261   : > { %v755_v1 = vrot.slane %v748_v60, %v754_v0 }
 0x263   : > { %v762_v2 = vrot.slane %v755_v1, %v754_v0 }
 0x265   : > { %768 = vst.msk [vmem:[%s229_s27] sm:$0x3] %vm766_vm9, %v762_v2 }
 0x266   : > { %1142 = shalt.err (!%p1139_p7)
}
 0x267   : > { %s1143_s8 = scalar_lea.hbm %s1470_s24, 32  ;;  %s1147_s14 = scalar_lea.hbm %s1518_s4, 64 }
 0x268   : > { %p1144_p9 = scmp.ne.s32.totalorder %s1470_s24, %s1143_s8  ;;  %p1148_p0 = scmp.lt.u32.totalorder %s1470_s24, %s1518_s4 }
 0x269   : > { %p1149_p11 = scmp.lt.u32.totalorder %s1147_s14, %s1143_s8  ;;  %p1151_p4 = scmp.lt.u32.totalorder %s1143_s8, %s1470_s24 }
 0x26a   : > { %p1145_p2 = pnand %p1144_p9, %p1345_p12 }
 0x26b   : > { %p1150_p1 = por %p1149_p11, %p1148_p0 }
 0x26c   : > { %p1146_p5 = pneg %p1145_p2 }
 0x26d   : > { %p1152_p6 = por %p1151_p4, %p1150_p1 }
 0x26f   : > { %p1153_p8 = pnand %p1152_p6, %p1146_p5 }
 0x271   : > { %1156 = shalt.err (!%p1153_p8)
}
 0x272   : > { %988 = dma.vmem_to_hbm [thread:$0]  (%p1345_p12), %s1472_s26, 32, %s1470_s24, %s770_s9  }
 0x273 PF: > { %s796_s5 = sand.u32 1, %s1187_s17   ;;  %p1533_p10 = scmp.ne.s32.totalorder %s1523_s23, 0 }
 0x274   : > { %p1534_p13 = scmp.ge.s32.totalorder %s1199_s20, 2  ;;  %s797_s6 = scalar_lea.sflag [#allocation5], %s796_s5 }
 0x276   : > { %p999_p3 = pnand %p1534_p13, %p1533_p10 }
 0x278   : > { %1182 = dma.done.wait (!%p999_p3), %s797_s6, 32  }
 0x279   : > { %1184 = vsyncadd (!%p999_p3), %s797_s6, 4294967264  ;;  %p19_p7 = scmp.ge.s32.totalorder %s1310_s28, 4   ;;  %s1535_s17 = smov %s1191_s18 }
 0x27a   : > { %s1536_s18 = smov %s1195_s19  ;;  %s1537_s19 = smov %s1341_s21 }
 0x27b   : > { %s1538_s20 = smov %s1310_s28  ;;  %21 = sbr.rel (!%p19_p7) target bundleno = 8 (0x8), region = 85 }
 0x282   :  { %802 = vsyncpa [#allocation4], 1 }
 0x283   :  { %804 = vsyncpa [#allocation4 + $0x1], 1 }
 0x284   :  { %805 = vsyncpa [#allocation7], 1 }
 0x285   :  { %806 = vsyncpa [#allocation5], 1 }
 0x286   :  { %808 = vsyncpa [#allocation5 + $0x1], 1 }

</bundles_post_ra>
